<compile_context>
chip_gen: v7x
topology: tpu7x:2x2x1
jax: 0.10.0
libtpu: 0.0.40
codegen_flags: <defaults>
</compile_context>

<pallas_src>
import jax
import jax.numpy as jnp
from jax import lax
from jax.experimental import pallas as pl
from jax.experimental.pallas import tpu as pltpu


def _round_up(x, m):
    return (x + m - 1) // m * m


def rnn_lm_kernel(ids_ref, h0_ref, emb_ref, wih_ref, whh_ref, bias_ref,
                  wout_ref, bout_ref, out_ref, hlast_ref, xp_ref, hs_ref):
    SB, H = xp_ref.shape          # SB = seq_len * bs_pad
    V = emb_ref.shape[0]          # vocab (= output_size)
    B = h0_ref.shape[0]           # padded batch (multiple of 8)
    S = SB // B                   # seq_len

    # ---- Preamble, fully off the serial path (each a single batched MXU op) ----
    # Fold the embedding table into the input projection: onehot(ids) @ (emb @ W_ih).
    w_ce = jnp.dot(emb_ref[...], wih_ref[...], preferred_element_type=jnp.float32)   # (V, H)
    onehot = (ids_ref[...] ==
              lax.broadcasted_iota(jnp.int32, (SB, V), 1)).astype(jnp.float32)       # (SB, V)
    # Pre-add the (b_ih + b_hh) bias so the recurrence body is just x_t + h@W_hh.
    xp_ref[...] = (jnp.dot(onehot, w_ce, preferred_element_type=jnp.float32)
                   + bias_ref[...])                                                   # (SB, H)

    w_hh = whh_ref[...]   # hoist weight load out of the loop

    # ---- Serial recurrence: only h @ W_hh + add + tanh on the critical path ----
    def step(t, h_prev):
        r = pl.multiple_of(t * B, 8)                      # sublane-aligned dynamic slice
        h_new = jnp.tanh(xp_ref[pl.ds(r, B), :]
                         + jnp.dot(h_prev, w_hh, preferred_element_type=jnp.float32))
        hs_ref[pl.ds(r, B), :] = h_new                    # stash for batched projection
        return h_new

    h_last = lax.fori_loop(0, S, step, h0_ref[...], unroll=True)
    hlast_ref[...] = h_last

    # ---- Batched, lane-dense output projection (one MXU matmul + one dense store) ----
    out_ref[...] = (jnp.dot(hs_ref[...], wout_ref[...], preferred_element_type=jnp.float32)
                    + bout_ref[...]).astype(out_ref.dtype)


def rnn_language_model(x_ids, h0, params):
    """x_ids: (seq_len, bs) int32, h0: (1, bs, H) or None. Returns (out, h_last)."""
    emb, w_ih, w_hh, b_ih, b_hh, w_out, b_out = (
        params["emb"], params["w_ih"], params["w_hh"], params["b_ih"],
        params["b_hh"], params["w_out"], params["b_out"])
    seq_len, bs = x_ids.shape
    H = w_hh.shape[0]
    O = w_out.shape[1]

    BS_PAD = _round_up(max(bs, 8), 8)      # fill f32 sublanes
    O_PAD = _round_up(O, 128)              # lane-dense logits store

    # Token ids, batch-padded and flattened to (seq*bs_pad, 1); pad rows gather row 0 (discarded).
    ids = jnp.pad(x_ids.astype(jnp.int32), ((0, 0), (0, BS_PAD - bs)))
    ids = ids.reshape(seq_len * BS_PAD, 1)

    if h0 is None:
        h0_2d = jnp.zeros((BS_PAD, H), jnp.float32)
    else:
        h0_2d = jnp.pad(h0[0].astype(jnp.float32), ((0, BS_PAD - bs), (0, 0)))

    bias = (b_ih + b_hh).reshape(1, H).astype(jnp.float32)
    w_out_p = jnp.pad(w_out.astype(jnp.float32), ((0, 0), (0, O_PAD - O)))
    b_out_p = jnp.pad(b_out.reshape(1, O).astype(jnp.float32), ((0, 0), (0, O_PAD - O)))

    vmem = pl.BlockSpec(memory_space=pltpu.MemorySpace.VMEM)
    out_pad, h_last_pad = pl.pallas_call(
        rnn_lm_kernel,
        out_shape=(jax.ShapeDtypeStruct((seq_len * BS_PAD, O_PAD), jnp.float32),
                   jax.ShapeDtypeStruct((BS_PAD, H), jnp.float32)),
        in_specs=[vmem] * 8,
        out_specs=(vmem, vmem),
        scratch_shapes=[pltpu.VMEM((seq_len * BS_PAD, H), jnp.float32),   # xp (input proj)
                        pltpu.VMEM((seq_len * BS_PAD, H), jnp.float32)],  # hs (hidden states)
    )(ids, h0_2d, emb.astype(jnp.float32), w_ih.astype(jnp.float32),
      w_hh.astype(jnp.float32), bias, w_out_p, b_out_p)

    # Drop batch/vocab padding (XLA glue; negligible at these sizes).
    out = (out_pad.reshape(seq_len, BS_PAD, O_PAD)[:, :bs, :O]
           .reshape(seq_len * bs, O))                 # matches torch: (seq_len*bs, output_size)
    h_last = h_last_pad[:bs][None, :, :]              # (num_layers=1, bs, H)
    return out, h_last


def reference_forward(x_ids, h0, params):
    """Pure-JAX reference of the PyTorch forward (RNN with tanh, batch_first=False)."""
    emb, w_ih, w_hh, b_ih, b_hh, w_out, b_out = (
        params["emb"], params["w_ih"], params["w_hh"], params["b_ih"],
        params["b_hh"], params["w_out"], params["b_out"])
    seq_len, bs = x_ids.shape
    H = w_hh.shape[0]
    x_emb = jnp.take(emb, x_ids, axis=0)
    h = jnp.zeros((bs, H), jnp.float32) if h0 is None else h0[0]
    outs = []
    for t in range(seq_len):
        h = jnp.tanh(x_emb[t] @ w_ih + h @ w_hh + b_ih[0] + b_hh[0])
        outs.append(h @ w_out + b_out[0])
    out = jnp.stack(outs, axis=0).reshape(seq_len * bs, -1)
    return out, h[None, :, :]


if __name__ == "__main__":
    # small shapes implied by the module
    seq_len, bs = 8, 2
    embedding_size, hidden_size, output_size = 16, 32, 64   # output_size = vocab size

    key = jax.random.PRNGKey(0)
    k = jax.random.split(key, 8)
    scale = 1.0 / jnp.sqrt(hidden_size)
    params = {
        # Embedding table (output_size, embedding_size)
        "emb":   jax.random.normal(k[0], (output_size, embedding_size), jnp.float32),
        # PyTorch weight_ih_l0 is (H, E); store transposed (E, H) for x @ W
        "w_ih":  jax.random.uniform(k[1], (embedding_size, hidden_size), jnp.float32, -scale, scale),
        "w_hh":  jax.random.uniform(k[2], (hidden_size, hidden_size), jnp.float32, -scale, scale),
        "b_ih":  jax.random.uniform(k[3], (1, hidden_size), jnp.float32, -scale, scale),
        "b_hh":  jax.random.uniform(k[4], (1, hidden_size), jnp.float32, -scale, scale),
        # Linear: PyTorch weight is (O, H); store transposed (H, O)
        "w_out": jax.random.uniform(k[5], (hidden_size, output_size), jnp.float32, -scale, scale),
        "b_out": jax.random.uniform(k[6], (1, output_size), jnp.float32, -scale, scale),
    }

    x_ids = jax.random.randint(k[7], (seq_len, bs), 0, output_size, jnp.int32)
    h0 = jnp.zeros((1, bs, hidden_size), jnp.float32)

    out, h_last = jax.jit(rnn_language_model)(x_ids, h0, params)
    jax.block_until_ready((out, h_last))

    ref_out, ref_h = reference_forward(x_ids, h0, params)
    assert out.shape == (seq_len * bs, output_size)
    assert h_last.shape == (1, bs, hidden_size)
    assert jnp.allclose(out, ref_out, atol=1e-4, rtol=1e-4)
    assert jnp.allclose(h_last, ref_h, atol=1e-4, rtol=1e-4)

    print("KERNEL_OK")
</pallas_src>

<mosaic_0001>
module attributes {stable_mosaic.version = 11 : i64} {
  func.func @rnn_lm_kernel(%arg0: memref<64x1xi32, #tpu.memory_space<vmem>>, %arg1: memref<8x32xf32, #tpu.memory_space<vmem>>, %arg2: memref<64x16xf32, #tpu.memory_space<vmem>>, %arg3: memref<16x32xf32, #tpu.memory_space<vmem>>, %arg4: memref<32x32xf32, #tpu.memory_space<vmem>>, %arg5: memref<1x32xf32, #tpu.memory_space<vmem>>, %arg6: memref<32x128xf32, #tpu.memory_space<vmem>>, %arg7: memref<1x128xf32, #tpu.memory_space<vmem>>, %arg8: memref<64x128xf32, #tpu.memory_space<vmem>>, %arg9: memref<8x32xf32, #tpu.memory_space<vmem>>, %arg10: memref<64x32xf32, #tpu.memory_space<vmem>>, %arg11: memref<64x32xf32, #tpu.memory_space<vmem>>) attributes {dimension_semantics = [], scalar_prefetch = 0 : i64, scratch_operands = 2 : i64, tpu.core_type = #tpu.core_type<tc>} {
    %c0 = arith.constant 0 : index
    %c0_0 = arith.constant 0 : index
    %0 = vector.load %arg2[%c0, %c0_0] : memref<64x16xf32, #tpu.memory_space<vmem>>, vector<64x16xf32>
    %c0_1 = arith.constant 0 : index
    %c0_2 = arith.constant 0 : index
    %1 = vector.load %arg3[%c0_1, %c0_2] : memref<16x32xf32, #tpu.memory_space<vmem>>, vector<16x32xf32>
    %cst = arith.constant dense<0.000000e+00> : vector<64x32xf32>
    %2 = tpu.matmul %0, %1, %cst {dimension_numbers = #tpu.dot_dimension_numbers<[1], [0], [0], [1], [0, 0, 1, 1], [], []>} : vector<64x16xf32>, vector<16x32xf32>, vector<64x32xf32> -> vector<64x32xf32>
    %c0_3 = arith.constant 0 : index
    %c0_4 = arith.constant 0 : index
    %3 = vector.load %arg0[%c0_3, %c0_4] : memref<64x1xi32, #tpu.memory_space<vmem>>, vector<64x1xi32>
    %4 = tpu.iota {dimensions = array<i32: 1>} : vector<64x64xi32>
    %5 = vector.broadcast %3 : vector<64x1xi32> to vector<64x64xi32>
    %6 = arith.cmpi eq, %5, %4 : vector<64x64xi32>
    %7 = arith.extui %6 : vector<64x64xi1> to vector<64x64xi32>
    %8 = arith.sitofp %7 : vector<64x64xi32> to vector<64x64xf32>
    %cst_5 = arith.constant dense<0.000000e+00> : vector<64x32xf32>
    %9 = tpu.matmul %8, %2, %cst_5 {dimension_numbers = #tpu.dot_dimension_numbers<[1], [0], [0], [1], [0, 0, 1, 1], [], []>} : vector<64x64xf32>, vector<64x32xf32>, vector<64x32xf32> -> vector<64x32xf32>
    %c0_6 = arith.constant 0 : index
    %c0_7 = arith.constant 0 : index
    %10 = vector.load %arg5[%c0_6, %c0_7] : memref<1x32xf32, #tpu.memory_space<vmem>>, vector<1x32xf32>
    %11 = vector.broadcast %10 : vector<1x32xf32> to vector<64x32xf32>
    %12 = arith.addf %9, %11 : vector<64x32xf32>
    %c0_8 = arith.constant 0 : index
    %c0_9 = arith.constant 0 : index
    %13 = vector.load %arg10[%c0_8, %c0_9] : memref<64x32xf32, #tpu.memory_space<vmem>>, vector<64x32xf32>
    tpu.vector_store %arg10[%c0_8, %c0_9], %12 {strides = array<i32>} : memref<64x32xf32, #tpu.memory_space<vmem>>, vector<64x32xf32>,
    %c0_10 = arith.constant 0 : index
    %c0_11 = arith.constant 0 : index
    %14 = vector.load %arg4[%c0_10, %c0_11] : memref<32x32xf32, #tpu.memory_space<vmem>>, vector<32x32xf32>
    %c0_12 = arith.constant 0 : index
    %c0_13 = arith.constant 0 : index
    %15 = vector.load %arg1[%c0_12, %c0_13] : memref<8x32xf32, #tpu.memory_space<vmem>>, vector<8x32xf32>
    %c0_i32 = arith.constant 0 : i32
    %c8_i32 = arith.constant 8 : i32
    %16 = arith.muli %c0_i32, %c8_i32 : i32
    %17 = tpu.assume_multiple %16, 8 : i32
    %18 = arith.index_cast %17 : i32 to index
    %c0_14 = arith.constant 0 : index
    %19 = vector.load %arg10[%18, %c0_14] : memref<64x32xf32, #tpu.memory_space<vmem>>, vector<8x32xf32>
    %cst_15 = arith.constant dense<0.000000e+00> : vector<8x32xf32>
    %20 = tpu.matmul %15, %14, %cst_15 {dimension_numbers = #tpu.dot_dimension_numbers<[1], [0], [0], [1], [0, 0, 1, 1], [], []>} : vector<8x32xf32>, vector<32x32xf32>, vector<8x32xf32> -> vector<8x32xf32>
    %21 = arith.addf %19, %20 : vector<8x32xf32>
    %22 = math.tanh %21 : vector<8x32xf32>
    %23 = arith.index_cast %17 : i32 to index
    %c0_16 = arith.constant 0 : index
    %24 = vector.load %arg11[%23, %c0_16] : memref<64x32xf32, #tpu.memory_space<vmem>>, vector<8x32xf32>
    tpu.vector_store %arg11[%23, %c0_16], %22 {strides = array<i32>} : memref<64x32xf32, #tpu.memory_space<vmem>>, vector<8x32xf32>,
    %c1_i32 = arith.constant 1 : i32
    %c8_i32_17 = arith.constant 8 : i32
    %25 = arith.muli %c1_i32, %c8_i32_17 : i32
    %26 = tpu.assume_multiple %25, 8 : i32
    %27 = arith.index_cast %26 : i32 to index
    %c0_18 = arith.constant 0 : index
    %28 = vector.load %arg10[%27, %c0_18] : memref<64x32xf32, #tpu.memory_space<vmem>>, vector<8x32xf32>
    %cst_19 = arith.constant dense<0.000000e+00> : vector<8x32xf32>
    %29 = tpu.matmul %22, %14, %cst_19 {dimension_numbers = #tpu.dot_dimension_numbers<[1], [0], [0], [1], [0, 0, 1, 1], [], []>} : vector<8x32xf32>, vector<32x32xf32>, vector<8x32xf32> -> vector<8x32xf32>
    %30 = arith.addf %28, %29 : vector<8x32xf32>
    %31 = math.tanh %30 : vector<8x32xf32>
    %32 = arith.index_cast %26 : i32 to index
    %c0_20 = arith.constant 0 : index
    %33 = vector.load %arg11[%32, %c0_20] : memref<64x32xf32, #tpu.memory_space<vmem>>, vector<8x32xf32>
    tpu.vector_store %arg11[%32, %c0_20], %31 {strides = array<i32>} : memref<64x32xf32, #tpu.memory_space<vmem>>, vector<8x32xf32>,
    %c2_i32 = arith.constant 2 : i32
    %c8_i32_21 = arith.constant 8 : i32
    %34 = arith.muli %c2_i32, %c8_i32_21 : i32
    %35 = tpu.assume_multiple %34, 8 : i32
    %36 = arith.index_cast %35 : i32 to index
    %c0_22 = arith.constant 0 : index
    %37 = vector.load %arg10[%36, %c0_22] : memref<64x32xf32, #tpu.memory_space<vmem>>, vector<8x32xf32>
    %cst_23 = arith.constant dense<0.000000e+00> : vector<8x32xf32>
    %38 = tpu.matmul %31, %14, %cst_23 {dimension_numbers = #tpu.dot_dimension_numbers<[1], [0], [0], [1], [0, 0, 1, 1], [], []>} : vector<8x32xf32>, vector<32x32xf32>, vector<8x32xf32> -> vector<8x32xf32>
    %39 = arith.addf %37, %38 : vector<8x32xf32>
    %40 = math.tanh %39 : vector<8x32xf32>
    %41 = arith.index_cast %35 : i32 to index
    %c0_24 = arith.constant 0 : index
    %42 = vector.load %arg11[%41, %c0_24] : memref<64x32xf32, #tpu.memory_space<vmem>>, vector<8x32xf32>
    tpu.vector_store %arg11[%41, %c0_24], %40 {strides = array<i32>} : memref<64x32xf32, #tpu.memory_space<vmem>>, vector<8x32xf32>,
    %c3_i32 = arith.constant 3 : i32
    %c8_i32_25 = arith.constant 8 : i32
    %43 = arith.muli %c3_i32, %c8_i32_25 : i32
    %44 = tpu.assume_multiple %43, 8 : i32
    %45 = arith.index_cast %44 : i32 to index
    %c0_26 = arith.constant 0 : index
    %46 = vector.load %arg10[%45, %c0_26] : memref<64x32xf32, #tpu.memory_space<vmem>>, vector<8x32xf32>
    %cst_27 = arith.constant dense<0.000000e+00> : vector<8x32xf32>
    %47 = tpu.matmul %40, %14, %cst_27 {dimension_numbers = #tpu.dot_dimension_numbers<[1], [0], [0], [1], [0, 0, 1, 1], [], []>} : vector<8x32xf32>, vector<32x32xf32>, vector<8x32xf32> -> vector<8x32xf32>
    %48 = arith.addf %46, %47 : vector<8x32xf32>
    %49 = math.tanh %48 : vector<8x32xf32>
    %50 = arith.index_cast %44 : i32 to index
    %c0_28 = arith.constant 0 : index
    %51 = vector.load %arg11[%50, %c0_28] : memref<64x32xf32, #tpu.memory_space<vmem>>, vector<8x32xf32>
    tpu.vector_store %arg11[%50, %c0_28], %49 {strides = array<i32>} : memref<64x32xf32, #tpu.memory_space<vmem>>, vector<8x32xf32>,
    %c4_i32 = arith.constant 4 : i32
    %c8_i32_29 = arith.constant 8 : i32
    %52 = arith.muli %c4_i32, %c8_i32_29 : i32
    %53 = tpu.assume_multiple %52, 8 : i32
    %54 = arith.index_cast %53 : i32 to index
    %c0_30 = arith.constant 0 : index
    %55 = vector.load %arg10[%54, %c0_30] : memref<64x32xf32, #tpu.memory_space<vmem>>, vector<8x32xf32>
    %cst_31 = arith.constant dense<0.000000e+00> : vector<8x32xf32>
    %56 = tpu.matmul %49, %14, %cst_31 {dimension_numbers = #tpu.dot_dimension_numbers<[1], [0], [0], [1], [0, 0, 1, 1], [], []>} : vector<8x32xf32>, vector<32x32xf32>, vector<8x32xf32> -> vector<8x32xf32>
    %57 = arith.addf %55, %56 : vector<8x32xf32>
    %58 = math.tanh %57 : vector<8x32xf32>
    %59 = arith.index_cast %53 : i32 to index
    %c0_32 = arith.constant 0 : index
    %60 = vector.load %arg11[%59, %c0_32] : memref<64x32xf32, #tpu.memory_space<vmem>>, vector<8x32xf32>
    tpu.vector_store %arg11[%59, %c0_32], %58 {strides = array<i32>} : memref<64x32xf32, #tpu.memory_space<vmem>>, vector<8x32xf32>,
    %c5_i32 = arith.constant 5 : i32
    %c8_i32_33 = arith.constant 8 : i32
    %61 = arith.muli %c5_i32, %c8_i32_33 : i32
    %62 = tpu.assume_multiple %61, 8 : i32
    %63 = arith.index_cast %62 : i32 to index
    %c0_34 = arith.constant 0 : index
    %64 = vector.load %arg10[%63, %c0_34] : memref<64x32xf32, #tpu.memory_space<vmem>>, vector<8x32xf32>
    %cst_35 = arith.constant dense<0.000000e+00> : vector<8x32xf32>
    %65 = tpu.matmul %58, %14, %cst_35 {dimension_numbers = #tpu.dot_dimension_numbers<[1], [0], [0], [1], [0, 0, 1, 1], [], []>} : vector<8x32xf32>, vector<32x32xf32>, vector<8x32xf32> -> vector<8x32xf32>
    %66 = arith.addf %64, %65 : vector<8x32xf32>
    %67 = math.tanh %66 : vector<8x32xf32>
    %68 = arith.index_cast %62 : i32 to index
    %c0_36 = arith.constant 0 : index
    %69 = vector.load %arg11[%68, %c0_36] : memref<64x32xf32, #tpu.memory_space<vmem>>, vector<8x32xf32>
    tpu.vector_store %arg11[%68, %c0_36], %67 {strides = array<i32>} : memref<64x32xf32, #tpu.memory_space<vmem>>, vector<8x32xf32>,
    %c6_i32 = arith.constant 6 : i32
    %c8_i32_37 = arith.constant 8 : i32
    %70 = arith.muli %c6_i32, %c8_i32_37 : i32
    %71 = tpu.assume_multiple %70, 8 : i32
    %72 = arith.index_cast %71 : i32 to index
    %c0_38 = arith.constant 0 : index
    %73 = vector.load %arg10[%72, %c0_38] : memref<64x32xf32, #tpu.memory_space<vmem>>, vector<8x32xf32>
    %cst_39 = arith.constant dense<0.000000e+00> : vector<8x32xf32>
    %74 = tpu.matmul %67, %14, %cst_39 {dimension_numbers = #tpu.dot_dimension_numbers<[1], [0], [0], [1], [0, 0, 1, 1], [], []>} : vector<8x32xf32>, vector<32x32xf32>, vector<8x32xf32> -> vector<8x32xf32>
    %75 = arith.addf %73, %74 : vector<8x32xf32>
    %76 = math.tanh %75 : vector<8x32xf32>
    %77 = arith.index_cast %71 : i32 to index
    %c0_40 = arith.constant 0 : index
    %78 = vector.load %arg11[%77, %c0_40] : memref<64x32xf32, #tpu.memory_space<vmem>>, vector<8x32xf32>
    tpu.vector_store %arg11[%77, %c0_40], %76 {strides = array<i32>} : memref<64x32xf32, #tpu.memory_space<vmem>>, vector<8x32xf32>,
    %c7_i32 = arith.constant 7 : i32
    %c8_i32_41 = arith.constant 8 : i32
    %79 = arith.muli %c7_i32, %c8_i32_41 : i32
    %80 = tpu.assume_multiple %79, 8 : i32
    %81 = arith.index_cast %80 : i32 to index
    %c0_42 = arith.constant 0 : index
    %82 = vector.load %arg10[%81, %c0_42] : memref<64x32xf32, #tpu.memory_space<vmem>>, vector<8x32xf32>
    %cst_43 = arith.constant dense<0.000000e+00> : vector<8x32xf32>
    %83 = tpu.matmul %76, %14, %cst_43 {dimension_numbers = #tpu.dot_dimension_numbers<[1], [0], [0], [1], [0, 0, 1, 1], [], []>} : vector<8x32xf32>, vector<32x32xf32>, vector<8x32xf32> -> vector<8x32xf32>
    %84 = arith.addf %82, %83 : vector<8x32xf32>
    %85 = math.tanh %84 : vector<8x32xf32>
    %86 = arith.index_cast %80 : i32 to index
    %c0_44 = arith.constant 0 : index
    %87 = vector.load %arg11[%86, %c0_44] : memref<64x32xf32, #tpu.memory_space<vmem>>, vector<8x32xf32>
    tpu.vector_store %arg11[%86, %c0_44], %85 {strides = array<i32>} : memref<64x32xf32, #tpu.memory_space<vmem>>, vector<8x32xf32>,
    %c8_i32_45 = arith.constant 8 : i32
    %c0_46 = arith.constant 0 : index
    %c0_47 = arith.constant 0 : index
    %88 = vector.load %arg9[%c0_46, %c0_47] : memref<8x32xf32, #tpu.memory_space<vmem>>, vector<8x32xf32>
    tpu.vector_store %arg9[%c0_46, %c0_47], %85 {strides = array<i32>} : memref<8x32xf32, #tpu.memory_space<vmem>>, vector<8x32xf32>,
    %c0_48 = arith.constant 0 : index
    %c0_49 = arith.constant 0 : index
    %89 = vector.load %arg11[%c0_48, %c0_49] : memref<64x32xf32, #tpu.memory_space<vmem>>, vector<64x32xf32>
    %c0_50 = arith.constant 0 : index
    %c0_51 = arith.constant 0 : index
    %90 = vector.load %arg6[%c0_50, %c0_51] : memref<32x128xf32, #tpu.memory_space<vmem>>, vector<32x128xf32>
    %cst_52 = arith.constant dense<0.000000e+00> : vector<64x128xf32>
    %91 = tpu.matmul %89, %90, %cst_52 {dimension_numbers = #tpu.dot_dimension_numbers<[1], [0], [0], [1], [0, 0, 1, 1], [], []>} : vector<64x32xf32>, vector<32x128xf32>, vector<64x128xf32> -> vector<64x128xf32>
    %c0_53 = arith.constant 0 : index
    %c0_54 = arith.constant 0 : index
    %92 = vector.load %arg7[%c0_53, %c0_54] : memref<1x128xf32, #tpu.memory_space<vmem>>, vector<1x128xf32>
    %93 = vector.broadcast %92 : vector<1x128xf32> to vector<64x128xf32>
    %94 = arith.addf %91, %93 : vector<64x128xf32>
    %c0_55 = arith.constant 0 : index
    %c0_56 = arith.constant 0 : index
    %95 = vector.load %arg8[%c0_55, %c0_56] : memref<64x128xf32, #tpu.memory_space<vmem>>, vector<64x128xf32>
    tpu.vector_store %arg8[%c0_55, %c0_56], %94 {strides = array<i32>} : memref<64x128xf32, #tpu.memory_space<vmem>>, vector<64x128xf32>,
    return
  }
}

</mosaic_0001>

<bundles_post_ra>
// kernel: rnn_language_model.1
= control target key start
LH: loop header
LB: loop body
LE: loop exit
PB: predicated region body
PF: predicated region fallthrough
CT: control target
= control target key end

     0   :  { %vm41_vm0 = vcmask 130048   ;;  %v1553_v3 = vmov 0   ;;  %v179_v20 = vlaneseq  ;;  %vm236_vm1 = vcmask 523264   ;;  %s1842_s3 = inlined_call_operand.vmem [shape: f32[16,32], index: 3, kind: input, shape index: {}]   ;;  %s1843_s2 = inlined_call_operand.vmem [shape: f32[64,16], index: 2, kind: input, shape index: {}]   ;;  %s1844_s0 = inlined_call_operand.vmem [shape: s32[64,1], index: 0, kind: input, shape index: {}]   ;;  %s1845_s4 = inlined_call_operand.vmem [shape: f32[32,32], index: 4, kind: input, shape index: {}]   ;;  %s1846_s1 = inlined_call_operand.vmem [shape: f32[8,32], index: 1, kind: input, shape index: {}]   ;;  %s1847_s5 = inlined_call_operand.vmem [shape: f32[1,32], index: 5, kind: input, shape index: {}]   ;;  %s1848_s6 = inlined_call_operand.vmem [shape: f32[32,128], index: 6, kind: input, shape index: {}]   ;;  %s1849_s7 = inlined_call_operand.vmem [shape: f32[1,128], index: 7, kind: input, shape index: {}]   ;;  %s1850_s8 = inlined_call_operand.vmem [shape: f32[64,128], index: 8, kind: output, shape index: {0}]   ;;  %s1851_s9 = inlined_call_operand.vmem [shape: f32[8,32], index: 9, kind: output, shape index: {1}]  }
   0x1   :  { %v39_v0 = vld [vmem:[%s1842_s3] sm:$0xff]  ;;  %v40_v1 = vld [vmem:[%s1842_s3 + $0x8] sm:$0xff]  ;;  %1535 = vset.pattern.permute.xlu0 %v1553_v3  ;;  %1536 = vset.pattern.permute.xlu1 %v1553_v3  ;;  %v173_v7 = vld [vmem:[%s1844_s0 + $0x10] sm:$0xff]  ;;  %v1554_v23 = vmov 0.0   ;;  %v1555_v49 = vmov 0.0|0.0   ;;  %vm1556_vm10 = vmmov 0  }
   0x2   :  { %v31_v2 = vld [vmem:[%s1843_s2] sm:$0xff]  ;;  %v1447_v4 = vpack.c.bf16 %v40_v1, %v39_v0  ;;  %v32_v6 = vld [vmem:[%s1843_s2 + $0x8] sm:$0xff]  ;;  %v33_v8 = vld [vmem:[%s1843_s2 + $0x10] sm:$0xff]  ;;  %188 = vperm.xlu1 %1536, %v173_v7   ;;  %v1669_v21 = vand.u32 127, %v179_v20  ;;  %vm366_vm11 = vcmask 261120  }
   0x3   :  { %1299 = vmatprep.mubr.msk.f32.mxu0 %vm41_vm0, %v31_v2  ;;  %v171_v5 = vld [vmem:[%s1844_s0] sm:$0xff]  ;;  %v172_v9 = vld [vmem:[%s1844_s0 + $0x8] sm:$0xff]  ;;  %v174_v10 = vld [vmem:[%s1844_s0 + $0x18] sm:$0xff] }
   0x4   :  { %1448 = vmatprep.subr.bf16.mxu0 %v1447_v4  ;;  %182 = vperm.xlu0 %1535, %v171_v5   ;;  %v34_v11 = vld [vmem:[%s1843_s2 + $0x18] sm:$0xff]  ;;  %v35_v12 = vld [vmem:[%s1843_s2 + $0x20] sm:$0xff]  ;;  %v176_v14 = vld [vmem:[%s1844_s0 + $0x28] sm:$0xff] }
   0x5   :  { %1450 = vmatpush3.bf16.msra.mxu0 %v1447_v4  ;;  %v175_v13 = vld [vmem:[%s1844_s0 + $0x20] sm:$0xff]  ;;  %v36_v15 = vld [vmem:[%s1843_s2 + $0x28] sm:$0xff]  ;;  %v37_v16 = vld [vmem:[%s1843_s2 + $0x30] sm:$0xff] }
   0x6   :  { %191 = vperm.xlu1 %1536, %v174_v10   ;;  %v177_v17 = vld [vmem:[%s1844_s0 + $0x30] sm:$0xff]  ;;  %v178_v18 = vld [vmem:[%s1844_s0 + $0x38] sm:$0xff]  ;;  %v375_v45 = vld [vmem:[%s1845_s4] sm:$0xff] }
   0x7   :  { %v38_v19 = vld [vmem:[%s1843_s2 + $0x38] sm:$0xff]  ;;  %v376_v46 = vld [vmem:[%s1845_s4 + $0x8] sm:$0xff]  ;;  %v377_v52 = vld [vmem:[%s1845_s4 + $0x10] sm:$0xff] }
   0x8   :  { %1300 = vmatmul.mubr.msk.f32.vlgmr.msra.gmra.mrb[0].mxu0 %vm41_vm0, %v32_v6  ;;  %185 = vperm.xlu0 %1535, %v172_v9   ;;  %v1692_v50 = vpack.c.bf16 %v376_v46, %v375_v45  ;;  %v378_v53 = vld [vmem:[%s1845_s4 + $0x18] sm:$0xff]  ;;  %v379_v58 = vld [vmem:[%s1846_s1] sm:$0xff] }
   0x9   :  { %1302 = vmatprep.mubr.msk.f32.mxu0 %vm41_vm0, %v33_v8  ;;  %v1712_v57 = vpack.c.bf16 %v378_v53, %v377_v52  ;;  %v1191_v59 = vld [vmem:[%s1847_s5] ss:$0 sm:$0xff]  ;;  %v1022_v45 = vld [vmem:[%s1848_s6 + $0x18] sm:$0xff] }
   0xa   :  { %197 = vperm.xlu1 %1536, %v176_v14  }
   0xc   :  { %1303 = vmatmul.mubr.msk.f32.gmra.mrb[2].mxu0 %vm41_vm0, %v34_v11  ;;  %194 = vperm.xlu0 %1535, %v175_v13  }
   0xd   :  { %1305 = vmatprep.mubr.msk.f32.mxu0 %vm41_vm0, %v35_v12 }
   0xe   :  { %203 = vperm.xlu1 %1536, %v178_v18  }
  0x10   :  { %1306 = vmatmul.mubr.msk.f32.gmra.mrb[4].mxu0 %vm41_vm0, %v36_v15  ;;  %200 = vperm.xlu0 %1535, %v177_v17  }
  0x11   :  { %1308 = vmatprep.mubr.msk.f32.mxu0 %vm41_vm0, %v37_v16 }
  0x14   :  { %1309 = vmatmul.mubr.msk.f32.gmra.mrb[6].mxu0 %vm41_vm0, %v38_v19 }
  0x81   :  { %v189_v28 = vpop.permute.xlu1 %188 }
  0x82   :  { %vm207_vm6 = vcmp.eq.s32.totalorder %v189_v28, %v1669_v21 }
  0x83   :  { %v183_v22 = vpop.permute.xlu0 %182  ;;  %v1185_v48 = vsel %vm207_vm6, 1.0, %v1554_v23 }
  0x84   :  { %vm205_vm2 = vcmp.eq.s32.totalorder %v183_v22, %v1669_v21 }
  0x85   :  { %v1183_v24 = vsel %vm205_vm2, 1.0, %v1554_v23  ;;  %v192_v32 = vpop.permute.xlu1 %191 }
  0x86   :  { %1327 = vmatprep.mubr.msk.f32.mxu0 %vm236_vm1, %v1183_v24  ;;  %vm208_vm8 = vcmp.eq.s32.totalorder %v192_v32, %v1669_v21 }
  0x87   :  { %v186_v25 = vpop.permute.xlu0 %185  ;;  %v1186_v55 = vsel %vm208_vm8, 1.0, %v1554_v23 }
  0x88   :  { %vm206_vm3 = vcmp.eq.s32.totalorder %v186_v25, %v1669_v21 }
  0x89   :  { %v198_v38 = vpop.permute.xlu1 %197  ;;  %v1184_v51 = vsel %vm206_vm3, 1.0, %v1554_v23 }
  0x8a   :  { %vm210_vm5 = vcmp.eq.s32.totalorder %v198_v38, %v1669_v21  ;;  %v1019_v38 = vld [vmem:[%s1848_s6] sm:$0xff] }
  0x8b   :  { %v195_v26 = vpop.permute.xlu0 %194  ;;  %v1188_v47 = vsel %vm210_vm5, 1.0, %v1554_v23 }
  0x8c   :  { %vm209_vm4 = vcmp.eq.s32.totalorder %v195_v26, %v1669_v21 }
  0x8d   :  { %v1187_v27 = vsel %vm209_vm4, 1.0, %v1554_v23  ;;  %v204_v44 = vpop.permute.xlu1 %203 }
  0x8e   :  { %1333 = vmatprep.mubr.msk.f32.mxu1 %vm236_vm1, %v1187_v27  ;;  %vm212_vm9 = vcmp.eq.s32.totalorder %v204_v44, %v1669_v21 }
  0x8f   :  { %v201_v43 = vpop.permute.xlu0 %200  ;;  %v1190_v56 = vsel %vm212_vm9, 1.0, %v1554_v23 }
  0x90   :  { %vm211_vm7 = vcmp.eq.s32.totalorder %v201_v43, %v1669_v21 }
  0x91   :  { %v1189_v54 = vsel %vm211_vm7, 1.0, %v1554_v23 }
  0xdb   :  { %v1301_v29 = vpop.f32.mrb[0].mxu0 }
  0xdc   :  { %v132_v30 = vpop.f32.mrb[1].mxu0 }
  0xdd   :  { %v1451_v31 = vpack.c.bf16 %v1301_v29, %v132_v30 }
  0xdf   :  { %v1304_v33 = vpop.f32.mrb[2].mxu0  ;;  %1452 = vmatprep.subr.bf16.mxu0 %v1451_v31  ;;  %1523 = vmatprep.subr.bf16.mxu1 %v1451_v31 }
  0xe0   :  { %v142_v34 = vpop.f32.mrb[3].mxu0  ;;  %1454 = vmatpush3.bf16.msra.mxu0 %v1451_v31  ;;  %1527 = vmatpush3.bf16.msra.mxu1 %v1451_v31 }
  0xe1   :  { %v1455_v35 = vpack.c.bf16 %v1304_v33, %v142_v34 }
  0xe3   :  { %v1307_v36 = vpop.f32.mrb[4].mxu0  ;;  %1456 = vmatprep.subr.bf16.mxu0 %v1455_v35  ;;  %1524 = vmatprep.subr.bf16.mxu1 %v1455_v35 }
  0xe4   :  { %v152_v37 = vpop.f32.mrb[5].mxu0  ;;  %1458 = vmatpush3.bf16.msra.mxu0 %v1455_v35  ;;  %1528 = vmatpush3.bf16.msra.mxu1 %v1455_v35 }
  0xe5   :  { %v1459_v39 = vpack.c.bf16 %v1307_v36, %v152_v37 }
  0xe7   :  { %v1310_v40 = vpop.f32.mrb[6].mxu0  ;;  %1460 = vmatprep.subr.bf16.mxu0 %v1459_v39  ;;  %1525 = vmatprep.subr.bf16.mxu1 %v1459_v39 }
  0xe8   :  { %v162_v41 = vpop.f32.mrb[7].mxu0  ;;  %1462 = vmatpush3.bf16.msra.mxu0 %v1459_v39  ;;  %1529 = vmatpush3.bf16.msra.mxu1 %v1459_v39  ;;  %v1020_v39 = vld [vmem:[%s1848_s6 + $0x8] sm:$0xff] }
  0xe9   :  { %v1463_v42 = vpack.c.bf16 %v1310_v40, %v162_v41  ;;  %v1515_v40 = vpack.c.bf16 %v1020_v39, %v1019_v38 }
  0xeb   :  { %1464 = vmatprep.subr.bf16.mxu0 %v1463_v42  ;;  %1526 = vmatprep.subr.bf16.mxu1 %v1463_v42 }
  0xec   :  { %1466 = vmatpush3.bf16.msra.mxu0 %v1463_v42  ;;  %1530 = vmatpush3.bf16.msra.mxu1 %v1463_v42 }
  0xed   :  { %1467 = vmatprep.subr.bf16.mxu0 %v1555_v49  ;;  %1479 = vmatprep.subr.bf16.mxu1 %v1555_v49 }
  0xef   :  { %1328 = vmatmul.mubr.msk.f32.vlgmr.msra.gmra.mrb[8].mxu0 %vm236_vm1, %v1184_v51  ;;  %1334 = vmatmul.mubr.msk.f32.vlgmr.msra.gmra.mrb[0].mxu1 %vm236_vm1, %v1188_v47 }
  0xf0   :  { %1336 = vmatprep.mubr.msk.f32.mxu1 %vm236_vm1, %v1189_v54  ;;  %1330 = vmatprep.mubr.msk.f32.mxu0 %vm236_vm1, %v1185_v48 }
  0xf1   :  { %1469 = vmatpush3.bf16.msra.mxu0 %v1692_v50  ;;  %1481 = vmatpush3.bf16.msra.mxu1 %v1692_v50 }
  0xf2   :  { %1470 = vmatprep.subr.bf16.mxu0 %v1555_v49  ;;  %1482 = vmatprep.subr.bf16.mxu1 %v1555_v49 }
  0xf3   :  { %1331 = vmatmul.mubr.msk.f32.gmra.mrb[10].mxu0 %vm236_vm1, %v1186_v55  ;;  %1337 = vmatmul.mubr.msk.f32.gmra.mrb[2].mxu1 %vm236_vm1, %v1190_v56 }
  0xf4   :  { %1347 = vmatprep.mubr.msk.f32.mxu0 %vm1556_vm10, %v1554_v23  ;;  %1369 = vmatprep.mubr.msk.f32.mxu1 %vm1556_vm10, %v1554_v23 }
  0xf5   :  { %1472 = vmatpush3.bf16.msra.mxu0 %v1712_v57  ;;  %1484 = vmatpush3.bf16.msra.mxu1 %v1712_v57 }
  0xf6   :  { %1473 = vmatprep.subr.bf16.mxu0 %v1555_v49  ;;  %1491 = vmatprep.subr.bf16.mxu1 %v1555_v49 }
  0xf8   :  { %1348 = vmatmul.mubr.msk.f32.vlgmr.msra.gmra.mrb[12].mxu0 %vm366_vm11, %v379_v58  ;;  %v1208_v58 = vld [vmem:[%s1849_s7] ss:$0 sm:$0xff] }
  0xf9   :  { %1475 = vmatpush3.bf16.msra.mxu0 %v1692_v50  ;;  %1358 = vmatprep.mubr.msk.f32.mxu0 %vm1556_vm10, %v1554_v23 }
  0xfa   :  { %1476 = vmatprep.subr.bf16.mxu0 %v1555_v49 }
  0xfd   :  { %1478 = vmatpush3.bf16.msra.mxu0 %v1712_v57 }
  0xfe   :  { %1485 = vmatprep.subr.bf16.mxu0 %v1555_v49 }
 0x1c2   :  { %v1329_v60 = vpop.f32.mrb[8].mxu0  ;;  %v1335_v61 = vpop.f32.mrb[0].mxu1 }
 0x1c3   :  { %v333_v62 = vadd.f32 %v1329_v60, %v1191_v59  ;;  %v327_v63 = vpop.f32.mrb[9].mxu0  ;;  %v353_v0 = vadd.f32 %v1335_v61, %v1191_v59  ;;  %v347_v1 = vpop.f32.mrb[1].mxu1 }
 0x1c4   :  { %v328_v2 = vadd.f32 %v1191_v59, %v327_v63  ;;  %v348_v3 = vadd.f32 %v1191_v59, %v347_v1 }
 0x1c5   :  { %368 = vst.msk [vmem:[#allocation2 + $0x8] sm:$0xff] %vm366_vm11, %v333_v62  ;;  %372 = vst.msk [vmem:[#allocation2 + $0x28] sm:$0xff] %vm366_vm11, %v353_v0 }
 0x1c6   :  { %367 = vst.msk [vmem:[#allocation2] sm:$0xff] %vm366_vm11, %v328_v2  ;;  %371 = vst.msk [vmem:[#allocation2 + $0x20] sm:$0xff] %vm366_vm11, %v348_v3  ;;  %v1332_v4 = vpop.f32.mrb[10].mxu0  ;;  %v1338_v5 = vpop.f32.mrb[2].mxu1 }
 0x1c7   :  { %v343_v6 = vadd.f32 %v1332_v4, %v1191_v59  ;;  %v363_v7 = vadd.f32 %v1338_v5, %v1191_v59  ;;  %v337_v8 = vpop.f32.mrb[11].mxu0  ;;  %v357_v9 = vpop.f32.mrb[3].mxu1 }
 0x1c8   :  { %v338_v10 = vadd.f32 %v1191_v59, %v337_v8  ;;  %v358_v11 = vadd.f32 %v1191_v59, %v357_v9 }
 0x1c9   :  { %370 = vst.msk [vmem:[#allocation2 + $0x18] sm:$0xff] %vm366_vm11, %v343_v6  ;;  %374 = vst.msk [vmem:[#allocation2 + $0x38] sm:$0xff] %vm366_vm11, %v363_v7 }
 0x1ca   :  { %369 = vst.msk [vmem:[#allocation2 + $0x10] sm:$0xff] %vm366_vm11, %v338_v10  ;;  %373 = vst.msk [vmem:[#allocation2 + $0x30] sm:$0xff] %vm366_vm11, %v358_v11 }
 0x1cb   :  { %v450_v12 = vpop.f32.mrb[12].mxu0 }
 0x1cc   :  { %v1349_v13 = vpop.f32.mrb[13].mxu0  ;;  %v458_v17 = vld [vmem:[#allocation2 + $0x8] sm:$0xff] }
 0x1cd   :  { %v380_v14 = vld [vmem:[#allocation2] sm:$0xff]  ;;  %v774_v41 = vld [vmem:[#allocation2 + $0x28] sm:$0xff] }
 0x1ce   :  { %v454_v15 = vadd.f32 %v450_v12, %v380_v14  ;;  %v695_v33 = vld [vmem:[#allocation2 + $0x20] sm:$0xff] }
 0x1d0   :  { %1537 = vtanh.f32 %v454_v15  ;;  %v616_v28 = vld [vmem:[#allocation2 + $0x18] sm:$0xff] }
 0x1d1   :  { %v537_v22 = vld [vmem:[#allocation2 + $0x10] sm:$0xff]  ;;  %v932_v9 = vld [vmem:[#allocation2 + $0x38] sm:$0xff] }
 0x1d2   :  { %v853_v54 = vld [vmem:[#allocation2 + $0x30] sm:$0xff] }
 0x1da   :  { %v1538_v16 = vpop.eup %1537 }
 0x1db   :  { %456 = vst.msk [vmem:[#allocation3] sm:$0xff] %vm366_vm11, %v1538_v16  ;;  %1359 = vmatmul.mubr.msk.f32.vlgmr.msra.gmra.mrb[14].mxu0 %vm366_vm11, %v1538_v16 }
 0x1dc   :  { %1487 = vmatpush3.bf16.msra.mxu0 %v1692_v50  ;;  %1380 = vmatprep.mubr.msk.f32.mxu0 %vm1556_vm10, %v1554_v23 }
 0x1dd   :  { %1488 = vmatprep.subr.bf16.mxu0 %v1555_v49 }
 0x1e0   :  { %1490 = vmatpush3.bf16.msra.mxu0 %v1712_v57 }
 0x1e1   :  { %1497 = vmatprep.subr.bf16.mxu0 %v1555_v49 }
 0x1e2   :  { %v1011_v48 = vld [vmem:[#allocation3] sm:$0xff] }
 0x2ae   :  { %v528_v18 = vpop.f32.mrb[14].mxu0 }
 0x2af   :  { %v532_v19 = vadd.f32 %v528_v18, %v458_v17  ;;  %v1360_v20 = vpop.f32.mrb[15].mxu0 }
 0x2b1   :  { %1539 = vtanh.f32 %v532_v19 }
 0x2bb   :  { %v1540_v21 = vpop.eup %1539 }
 0x2bc   :  { %535 = vst.msk [vmem:[#allocation3 + $0x8] sm:$0xff] %vm366_vm11, %v1540_v21  ;;  %1370 = vmatmul.mubr.msk.f32.vlgmr.msra.gmra.mrb[4].mxu1 %vm366_vm11, %v1540_v21 }
 0x2bd   :  { %1493 = vmatpush3.bf16.msra.mxu1 %v1692_v50  ;;  %1391 = vmatprep.mubr.msk.f32.mxu1 %vm1556_vm10, %v1554_v23 }
 0x2be   :  { %1494 = vmatprep.subr.bf16.mxu1 %v1555_v49 }
 0x2c1   :  { %1496 = vmatpush3.bf16.msra.mxu1 %v1712_v57 }
 0x2c2   :  { %1503 = vmatprep.subr.bf16.mxu1 %v1555_v49 }
 0x38f   :  { %v607_v24 = vpop.f32.mrb[4].mxu1 }
 0x390   :  { %v611_v25 = vadd.f32 %v607_v24, %v537_v22  ;;  %v1371_v26 = vpop.f32.mrb[5].mxu1 }
 0x392   :  { %1541 = vtanh.f32 %v611_v25 }
 0x39c   :  { %v1542_v27 = vpop.eup %1541 }
 0x39d   :  { %614 = vst.msk [vmem:[#allocation3 + $0x10] sm:$0xff] %vm366_vm11, %v1542_v27  ;;  %1381 = vmatmul.mubr.msk.f32.vlgmr.msra.gmra.mrb[16].mxu0 %vm366_vm11, %v1542_v27 }
 0x39e   :  { %1499 = vmatpush3.bf16.msra.mxu0 %v1692_v50  ;;  %1402 = vmatprep.mubr.msk.f32.mxu0 %vm1556_vm10, %v1554_v23 }
 0x39f   :  { %1500 = vmatprep.subr.bf16.mxu0 %v1555_v49 }
 0x3a2   :  { %1502 = vmatpush3.bf16.msra.mxu0 %v1712_v57 }
 0x3a3   :  { %1509 = vmatprep.subr.bf16.mxu0 %v1555_v49 }
 0x470   :  { %v686_v29 = vpop.f32.mrb[16].mxu0 }
 0x471   :  { %v690_v30 = vadd.f32 %v686_v29, %v616_v28  ;;  %v1382_v31 = vpop.f32.mrb[17].mxu0 }
 0x473   :  { %1543 = vtanh.f32 %v690_v30 }
 0x47d   :  { %v1544_v32 = vpop.eup %1543 }
 0x47e   :  { %693 = vst.msk [vmem:[#allocation3 + $0x18] sm:$0xff] %vm366_vm11, %v1544_v32  ;;  %1392 = vmatmul.mubr.msk.f32.vlgmr.msra.gmra.mrb[6].mxu1 %vm366_vm11, %v1544_v32 }
 0x47f   :  { %1505 = vmatpush3.bf16.msra.mxu1 %v1692_v50  ;;  %1413 = vmatprep.mubr.msk.f32.mxu1 %vm1556_vm10, %v1554_v23 }
 0x480   :  { %1506 = vmatprep.subr.bf16.mxu1 %v1555_v49 }
 0x483   :  { %1508 = vmatpush3.bf16.msra.mxu1 %v1712_v57 }
 0x484   :  { %1516 = vmatprep.subr.bf16.mxu1 %v1515_v40 }
 0x485   :  { %v1014_v51 = vld [vmem:[#allocation3 + $0x18] sm:$0xff] }
 0x551   :  { %v765_v34 = vpop.f32.mrb[6].mxu1 }
 0x552   :  { %v769_v35 = vadd.f32 %v765_v34, %v695_v33  ;;  %v1393_v36 = vpop.f32.mrb[7].mxu1 }
 0x554   :  { %1545 = vtanh.f32 %v769_v35 }
 0x55e   :  { %v1546_v37 = vpop.eup %1545 }
 0x55f   :  { %772 = vst.msk [vmem:[#allocation3 + $0x20] sm:$0xff] %vm366_vm11, %v1546_v37  ;;  %1403 = vmatmul.mubr.msk.f32.vlgmr.msra.gmra.mrb[18].mxu0 %vm366_vm11, %v1546_v37 }
 0x560   :  { %1511 = vmatpush3.bf16.msra.mxu0 %v1692_v50  ;;  %1424 = vmatprep.mubr.msk.f32.mxu0 %vm1556_vm10, %v1554_v23  ;;  %v1021_v23 = vld [vmem:[%s1848_s6 + $0x10] sm:$0xff] }
 0x561   :  { %1512 = vmatprep.subr.bf16.mxu0 %v1555_v49  ;;  %v1519_v46 = vpack.c.bf16 %v1022_v45, %v1021_v23  ;;  %v1012_v49 = vld [vmem:[#allocation3 + $0x8] sm:$0xff]  ;;  %v1013_v50 = vld [vmem:[#allocation3 + $0x10] sm:$0xff] }
 0x564   :  { %1514 = vmatpush3.bf16.msra.mxu0 %v1712_v57 }
 0x566   :  { %v1015_v52 = vld [vmem:[#allocation3 + $0x20] sm:$0xff] }
 0x632   :  { %v844_v42 = vpop.f32.mrb[18].mxu0 }
 0x633   :  { %v848_v43 = vadd.f32 %v844_v42, %v774_v41  ;;  %v1404_v44 = vpop.f32.mrb[19].mxu0 }
 0x635   :  { %1547 = vtanh.f32 %v848_v43 }
 0x63f   :  { %v1548_v47 = vpop.eup %1547 }
 0x640   :  { %851 = vst.msk [vmem:[#allocation3 + $0x28] sm:$0xff] %vm366_vm11, %v1548_v47  ;;  %1414 = vmatmul.mubr.msk.f32.vlgmr.msra.gmra.mrb[8].mxu1 %vm366_vm11, %v1548_v47 }
 0x641   :  { %1518 = vmatpush3.bf16.msra.mxu1 %v1515_v40  ;;  %1435 = vmatprep.mubr.msk.f32.mxu1 %vm366_vm11, %v1011_v48 }
 0x642   :  { %1520 = vmatprep.subr.bf16.mxu1 %v1519_v46 }
 0x645   :  { %1522 = vmatpush3.bf16.msra.mxu1 %v1519_v46 }
 0x647   :  { %v1016_v53 = vld [vmem:[#allocation3 + $0x28] sm:$0xff] }
 0x648   :  { %1436 = vmatmul.mubr.msk.f32.vlgmr.msra.gmra.mrb[10].mxu1 %vm366_vm11, %v1012_v49 }
 0x649   :  { %1438 = vmatprep.mubr.msk.f32.mxu1 %vm366_vm11, %v1013_v50 }
 0x64c   :  { %1439 = vmatmul.mubr.msk.f32.gmra.mrb[12].mxu1 %vm366_vm11, %v1014_v51 }
 0x64d   :  { %1441 = vmatprep.mubr.msk.f32.mxu1 %vm366_vm11, %v1015_v52 }
 0x650   :  { %1442 = vmatmul.mubr.msk.f32.gmra.mrb[14].mxu1 %vm366_vm11, %v1016_v53 }
 0x713   :  { %v923_v55 = vpop.f32.mrb[8].mxu1 }
 0x714   :  { %v927_v56 = vadd.f32 %v923_v55, %v853_v54  ;;  %v1415_v57 = vpop.f32.mrb[9].mxu1 }
 0x716   :  { %1549 = vtanh.f32 %v927_v56 }
 0x71b   :  { %v1437_v59 = vpop.f32.mrb[10].mxu1 }
 0x71c   :  { %v1126_v60 = vadd.f32 %v1437_v59, %v1208_v58  ;;  %v1120_v61 = vpop.f32.mrb[11].mxu1 }
 0x71d   :  { %v1121_v62 = vadd.f32 %v1208_v58, %v1120_v61 }
 0x71e   :  { %1160 = vst [vmem:[%s1850_s8 + $0x8] sm:$0xff] %v1126_v60 }
 0x71f   :  { %1159 = vst [vmem:[%s1850_s8] sm:$0xff] %v1121_v62  ;;  %v1440_v63 = vpop.f32.mrb[12].mxu1 }
 0x720   :  { %v1550_v0 = vpop.eup %1549  ;;  %v1136_v1 = vadd.f32 %v1440_v63, %v1208_v58  ;;  %v1130_v2 = vpop.f32.mrb[13].mxu1 }
 0x721   :  { %930 = vst.msk [vmem:[#allocation3 + $0x30] sm:$0xff] %vm366_vm11, %v1550_v0  ;;  %v1131_v3 = vadd.f32 %v1208_v58, %v1130_v2  ;;  %1425 = vmatmul.mubr.msk.f32.vlgmr.msra.gmra.mrb[20].mxu0 %vm366_vm11, %v1550_v0 }
 0x722   :  { %1162 = vst [vmem:[%s1850_s8 + $0x18] sm:$0xff] %v1136_v1 }
 0x723   :  { %1161 = vst [vmem:[%s1850_s8 + $0x10] sm:$0xff] %v1131_v3  ;;  %v1443_v4 = vpop.f32.mrb[14].mxu1 }
 0x724   :  { %v1146_v5 = vadd.f32 %v1443_v4, %v1208_v58  ;;  %v1140_v6 = vpop.f32.mrb[15].mxu1 }
 0x725   :  { %v1141_v7 = vadd.f32 %v1208_v58, %v1140_v6 }
 0x726   :  { %1164 = vst [vmem:[%s1850_s8 + $0x28] sm:$0xff] %v1146_v5 }
 0x727   :  { %1163 = vst [vmem:[%s1850_s8 + $0x20] sm:$0xff] %v1141_v7 }
 0x728   :  { %v1017_v8 = vld [vmem:[#allocation3 + $0x30] sm:$0xff] }
 0x729   :  { %1444 = vmatprep.mubr.msk.f32.mxu1 %vm366_vm11, %v1017_v8 }
 0x7f4   :  { %v1002_v10 = vpop.f32.mrb[20].mxu0 }
 0x7f5   :  { %v1006_v11 = vadd.f32 %v1002_v10, %v932_v9  ;;  %v1426_v12 = vpop.f32.mrb[21].mxu0 }
 0x7f7   :  { %1551 = vtanh.f32 %v1006_v11 }
 0x801   :  { %v1552_v13 = vpop.eup %1551 }
 0x802   :  { %1009 = vst.msk [vmem:[#allocation3 + $0x38] sm:$0xff] %vm366_vm11, %v1552_v13  ;;  %1010 = vst.msk [vmem:[%s1851_s9] sm:$0xff] %vm366_vm11, %v1552_v13 }
 0x809   :  { %v1018_v14 = vld [vmem:[#allocation3 + $0x38] sm:$0xff] }
 0x80a   :  { %1445 = vmatmul.mubr.msk.f32.gmra.mrb[16].mxu1 %vm366_vm11, %v1018_v14 }
 0x8dd   :  { %v1446_v15 = vpop.f32.mrb[16].mxu1 }
 0x8de   :  { %v1156_v16 = vadd.f32 %v1446_v15, %v1208_v58  ;;  %v1150_v17 = vpop.f32.mrb[17].mxu1 }
 0x8df   :  { %v1151_v18 = vadd.f32 %v1208_v58, %v1150_v17 }
 0x8e0   :  { %1166 = vst [vmem:[%s1850_s8 + $0x38] sm:$0xff] %v1156_v16 }
 0x8e1   :  { %1165 = vst [vmem:[%s1850_s8 + $0x30] sm:$0xff] %v1151_v18 }

</bundles_post_ra>
